<compile_context>
chip_gen: v7x
topology: tpu7x:2x2x1
jax: 0.10.0
libtpu: 0.0.40
codegen_flags: <defaults>
</compile_context>

<pallas_src>
import functools

import jax
import jax.numpy as jnp
from jax.experimental import pallas as pl
from jax.experimental.pallas import tpu as pltpu


def fat_kernel(x_ref,
               w1_ref, b1_ref, w2_ref, b2_ref, w3_ref, b3_ref,
               w4_ref, b4_ref, w5_ref, b5_ref,
               o_ref):
    # x_ref: [in_f, tile_b]  (batch on lanes).
    # w_i:   [fan_out, fan_in]   b_i: [fan_out, 1]  (VPU broadcast add).
    h = x_ref[...]
    h = jnp.maximum(
        jnp.dot(w1_ref[...], h, preferred_element_type=jnp.float32) + b1_ref[...], 0.0)
    h = jnp.maximum(
        jnp.dot(w2_ref[...], h, preferred_element_type=jnp.float32) + b2_ref[...], 0.0)
    h = jnp.maximum(
        jnp.dot(w3_ref[...], h, preferred_element_type=jnp.float32) + b3_ref[...], 0.0)
    h = jnp.maximum(
        jnp.dot(w4_ref[...], h, preferred_element_type=jnp.float32) + b4_ref[...], 0.0)
    o_ref[...] = (
        jnp.dot(w5_ref[...], h, preferred_element_type=jnp.float32) + b5_ref[...]
    ).astype(o_ref.dtype)


def prepare_params(params):
    """One-time weight prep, hoisted out of the per-call path.

    params: list of (W [fan_in, fan_out], b [fan_out]) as in nn.Linear.
    Returns (ws, bs) with W transposed to [fan_out, fan_in] (kernel works on
    transposed activations) and b reshaped to [fan_out, 1].
    """
    ws = tuple(jnp.asarray(w).T for (w, _) in params)
    bs = tuple(jnp.asarray(b).reshape(-1, 1) for (_, b) in params)
    return ws, bs


def select_tile_b(batch):
    """grid=(1,) on single-TC chips (v5e/v6e); 2 parallel tiles only on dual-TC v7x."""
    try:
        dual_core = "v7" in jax.devices()[0].device_kind.lower()
    except Exception:  # pragma: no cover - defensive, fall back to single tile
        dual_core = False
    if dual_core and batch >= 512 and batch % 2 == 0 and (batch // 2) % 256 == 0:
        return batch // 2
    return batch


@functools.partial(jax.jit, static_argnames=("tile_b",))
def fat_forward(x, ws, bs, *, tile_b):
    """x: [B, in_feature] f32.  ws/bs: outputs of prepare_params."""
    B, in_f = x.shape
    out_f = ws[-1].shape[0]
    assert B % tile_b == 0, "batch must be divisible by tile_b"
    n_tiles = B // tile_b

    x_t = x.T  # [in_f, B], batch on lanes

    # Weights/biases are tiny and VMEM-resident: full-array blocks, constant index_map.
    wb_args = []
    wb_specs = []
    for w, b in zip(ws, bs):
        wb_args += [w, b]
        wb_specs += [pl.BlockSpec(w.shape, lambda i: (0, 0)),
                     pl.BlockSpec(b.shape, lambda i: (0, 0))]

    flops = 2 * B * sum(int(w.shape[0]) * int(w.shape[1]) for w in ws)
    bytes_accessed = 4 * (
        B * (in_f + out_f)
        + sum(int(w.size) + int(b.size) for w, b in zip(ws, bs))
    )
    cost = pl.CostEstimate(flops=flops, transcendentals=0,
                           bytes_accessed=int(bytes_accessed))

    out_t = pl.pallas_call(
        fat_kernel,
        out_shape=jax.ShapeDtypeStruct((out_f, B), jnp.float32),
        grid=(n_tiles,),
        in_specs=[pl.BlockSpec((in_f, tile_b), lambda i: (0, i))] + wb_specs,
        out_specs=pl.BlockSpec((out_f, tile_b), lambda i: (0, i)),
        compiler_params=pltpu.CompilerParams(dimension_semantics=("parallel",)),
        cost_estimate=cost,
    )(x_t, *wb_args)

    return out_t.T  # back to [B, out_f]


def init_params(key, dims):
    """PyTorch nn.Linear-style uniform init, deterministic via PRNGKey."""
    params = []
    for fan_in, fan_out in zip(dims[:-1], dims[1:]):
        key, kw, kb = jax.random.split(key, 3)
        bound = 1.0 / jnp.sqrt(jnp.float32(fan_in))
        w = jax.random.uniform(kw, (fan_in, fan_out), jnp.float32, -bound, bound)
        b = jax.random.uniform(kb, (fan_out,), jnp.float32, -bound, bound)
        params.append((w, b))
    return params


def fat_reference(x, params):
    h = x
    for (w, b) in params[:-1]:
        h = jnp.maximum(h @ w + b, 0.0)
    w, b = params[-1]
    return h @ w + b


if __name__ == "__main__":
    key = jax.random.PRNGKey(0)
    # Module dims: in_feature=8, h1=16, h2=32, h3=16, h4=8, out_feature=3
    dims = (8, 16, 32, 16, 8, 3)
    batch = 512  # lane-dense batch; 1 tile on v5e/v6e, 2x256 parallel tiles on v7x

    key, kx = jax.random.split(key)
    x = jax.random.normal(kx, (batch, dims[0]), jnp.float32)
    params = init_params(key, dims)

    ws, bs = prepare_params(params)       # one-time weight prep (not per call)
    tile_b = select_tile_b(batch)

    out = fat_forward(x, ws, bs, tile_b=tile_b)
    out = jax.block_until_ready(out)

    ref = fat_reference(x, params)
    assert out.shape == (batch, dims[-1])
    assert jnp.allclose(out, ref, atol=1e-3, rtol=1e-3), "mismatch vs reference"

    print("KERNEL_OK")
</pallas_src>

<mosaic_0001>
module attributes {stable_mosaic.version = 11 : i64} {
  func.func @fat_kernel(%arg0: i32, %arg1: memref<8x512xf32, #tpu.memory_space<vmem>>, %arg2: memref<16x8xf32, #tpu.memory_space<vmem>>, %arg3: memref<16x1xf32, #tpu.memory_space<vmem>>, %arg4: memref<32x16xf32, #tpu.memory_space<vmem>>, %arg5: memref<32x1xf32, #tpu.memory_space<vmem>>, %arg6: memref<16x32xf32, #tpu.memory_space<vmem>>, %arg7: memref<16x1xf32, #tpu.memory_space<vmem>>, %arg8: memref<8x16xf32, #tpu.memory_space<vmem>>, %arg9: memref<8x1xf32, #tpu.memory_space<vmem>>, %arg10: memref<3x8xf32, #tpu.memory_space<vmem>>, %arg11: memref<3x1xf32, #tpu.memory_space<vmem>>, %arg12: memref<3x512xf32, #tpu.memory_space<vmem>>) attributes {dimension_semantics = [#tpu.dimension_semantics<parallel>], iteration_bounds = array<i64: 1>, scalar_prefetch = 0 : i64, scratch_operands = 0 : i64, tpu.core_type = #tpu.core_type<tc>, window_params = [{transform_indices = @transform_0, window_bounds = array<i64: 8, 512>}, {pipeline_mode = #tpu.pipeline_mode<synchronous>, transform_indices = @transform_1, window_bounds = array<i64: 16, 8>}, {pipeline_mode = #tpu.pipeline_mode<synchronous>, transform_indices = @transform_2, window_bounds = array<i64: 16, 1>}, {pipeline_mode = #tpu.pipeline_mode<synchronous>, transform_indices = @transform_3, window_bounds = array<i64: 32, 16>}, {pipeline_mode = #tpu.pipeline_mode<synchronous>, transform_indices = @transform_4, window_bounds = array<i64: 32, 1>}, {pipeline_mode = #tpu.pipeline_mode<synchronous>, transform_indices = @transform_5, window_bounds = array<i64: 16, 32>}, {pipeline_mode = #tpu.pipeline_mode<synchronous>, transform_indices = @transform_6, window_bounds = array<i64: 16, 1>}, {pipeline_mode = #tpu.pipeline_mode<synchronous>, transform_indices = @transform_7, window_bounds = array<i64: 8, 16>}, {pipeline_mode = #tpu.pipeline_mode<synchronous>, transform_indices = @transform_8, window_bounds = array<i64: 8, 1>}, {pipeline_mode = #tpu.pipeline_mode<synchronous>, transform_indices = @transform_9, window_bounds = array<i64: 3, 8>}, {pipeline_mode = #tpu.pipeline_mode<synchronous>, transform_indices = @transform_10, window_bounds = array<i64: 3, 1>}, {transform_indices = @transform_11, window_bounds = array<i64: 3, 512>}]} {
    %c0 = arith.constant 0 : index
    %c0_0 = arith.constant 0 : index
    %0 = vector.load %arg1[%c0, %c0_0] : memref<8x512xf32, #tpu.memory_space<vmem>>, vector<8x512xf32>
    %c0_1 = arith.constant 0 : index
    %c0_2 = arith.constant 0 : index
    %1 = vector.load %arg2[%c0_1, %c0_2] : memref<16x8xf32, #tpu.memory_space<vmem>>, vector<16x8xf32>
    %cst = arith.constant dense<0.000000e+00> : vector<16x512xf32>
    %2 = tpu.matmul %1, %0, %cst {dimension_numbers = #tpu.dot_dimension_numbers<[1], [0], [0], [1], [0, 0, 1, 1], [], []>} : vector<16x8xf32>, vector<8x512xf32>, vector<16x512xf32> -> vector<16x512xf32>
    %c0_3 = arith.constant 0 : index
    %c0_4 = arith.constant 0 : index
    %3 = vector.load %arg3[%c0_3, %c0_4] : memref<16x1xf32, #tpu.memory_space<vmem>>, vector<16x1xf32>
    %4 = vector.broadcast %3 : vector<16x1xf32> to vector<16x512xf32>
    %5 = arith.addf %2, %4 : vector<16x512xf32>
    %cst_5 = arith.constant 0.000000e+00 : f32
    %6 = vector.broadcast %cst_5 : f32 to vector<16x512xf32>
    %7 = arith.maximumf %5, %6 : vector<16x512xf32>
    %c0_6 = arith.constant 0 : index
    %c0_7 = arith.constant 0 : index
    %8 = vector.load %arg4[%c0_6, %c0_7] : memref<32x16xf32, #tpu.memory_space<vmem>>, vector<32x16xf32>
    %cst_8 = arith.constant dense<0.000000e+00> : vector<32x512xf32>
    %9 = tpu.matmul %8, %7, %cst_8 {dimension_numbers = #tpu.dot_dimension_numbers<[1], [0], [0], [1], [0, 0, 1, 1], [], []>} : vector<32x16xf32>, vector<16x512xf32>, vector<32x512xf32> -> vector<32x512xf32>
    %c0_9 = arith.constant 0 : index
    %c0_10 = arith.constant 0 : index
    %10 = vector.load %arg5[%c0_9, %c0_10] : memref<32x1xf32, #tpu.memory_space<vmem>>, vector<32x1xf32>
    %11 = vector.broadcast %10 : vector<32x1xf32> to vector<32x512xf32>
    %12 = arith.addf %9, %11 : vector<32x512xf32>
    %cst_11 = arith.constant 0.000000e+00 : f32
    %13 = vector.broadcast %cst_11 : f32 to vector<32x512xf32>
    %14 = arith.maximumf %12, %13 : vector<32x512xf32>
    %c0_12 = arith.constant 0 : index
    %c0_13 = arith.constant 0 : index
    %15 = vector.load %arg6[%c0_12, %c0_13] : memref<16x32xf32, #tpu.memory_space<vmem>>, vector<16x32xf32>
    %cst_14 = arith.constant dense<0.000000e+00> : vector<16x512xf32>
    %16 = tpu.matmul %15, %14, %cst_14 {dimension_numbers = #tpu.dot_dimension_numbers<[1], [0], [0], [1], [0, 0, 1, 1], [], []>} : vector<16x32xf32>, vector<32x512xf32>, vector<16x512xf32> -> vector<16x512xf32>
    %c0_15 = arith.constant 0 : index
    %c0_16 = arith.constant 0 : index
    %17 = vector.load %arg7[%c0_15, %c0_16] : memref<16x1xf32, #tpu.memory_space<vmem>>, vector<16x1xf32>
    %18 = vector.broadcast %17 : vector<16x1xf32> to vector<16x512xf32>
    %19 = arith.addf %16, %18 : vector<16x512xf32>
    %cst_17 = arith.constant 0.000000e+00 : f32
    %20 = vector.broadcast %cst_17 : f32 to vector<16x512xf32>
    %21 = arith.maximumf %19, %20 : vector<16x512xf32>
    %c0_18 = arith.constant 0 : index
    %c0_19 = arith.constant 0 : index
    %22 = vector.load %arg8[%c0_18, %c0_19] : memref<8x16xf32, #tpu.memory_space<vmem>>, vector<8x16xf32>
    %cst_20 = arith.constant dense<0.000000e+00> : vector<8x512xf32>
    %23 = tpu.matmul %22, %21, %cst_20 {dimension_numbers = #tpu.dot_dimension_numbers<[1], [0], [0], [1], [0, 0, 1, 1], [], []>} : vector<8x16xf32>, vector<16x512xf32>, vector<8x512xf32> -> vector<8x512xf32>
    %c0_21 = arith.constant 0 : index
    %c0_22 = arith.constant 0 : index
    %24 = vector.load %arg9[%c0_21, %c0_22] : memref<8x1xf32, #tpu.memory_space<vmem>>, vector<8x1xf32>
    %25 = vector.broadcast %24 : vector<8x1xf32> to vector<8x512xf32>
    %26 = arith.addf %23, %25 : vector<8x512xf32>
    %cst_23 = arith.constant 0.000000e+00 : f32
    %27 = vector.broadcast %cst_23 : f32 to vector<8x512xf32>
    %28 = arith.maximumf %26, %27 : vector<8x512xf32>
    %c0_24 = arith.constant 0 : index
    %c0_25 = arith.constant 0 : index
    %29 = vector.load %arg10[%c0_24, %c0_25] : memref<3x8xf32, #tpu.memory_space<vmem>>, vector<3x8xf32>
    %cst_26 = arith.constant dense<0.000000e+00> : vector<3x512xf32>
    %30 = tpu.matmul %29, %28, %cst_26 {dimension_numbers = #tpu.dot_dimension_numbers<[1], [0], [0], [1], [0, 0, 1, 1], [], []>} : vector<3x8xf32>, vector<8x512xf32>, vector<3x512xf32> -> vector<3x512xf32>
    %c0_27 = arith.constant 0 : index
    %c0_28 = arith.constant 0 : index
    %31 = vector.load %arg11[%c0_27, %c0_28] : memref<3x1xf32, #tpu.memory_space<vmem>>, vector<3x1xf32>
    %32 = vector.broadcast %31 : vector<3x1xf32> to vector<3x512xf32>
    %33 = arith.addf %30, %32 : vector<3x512xf32>
    %c0_29 = arith.constant 0 : index
    %c0_30 = arith.constant 0 : index
    %34 = vector.load %arg12[%c0_29, %c0_30] : memref<3x512xf32, #tpu.memory_space<vmem>>, vector<3x512xf32>
    tpu.vector_store %arg12[%c0_29, %c0_30], %33 {strides = array<i32>} : memref<3x512xf32, #tpu.memory_space<vmem>>, vector<3x512xf32>,
    return
  }
  func.func @transform_0(%arg0: i32) -> (i32, i32) {
    %c0_i32 = arith.constant 0 : i32
    %c0_i32_0 = arith.constant 0 : i32
    return %c0_i32, %arg0 : i32, i32
  }
  func.func @transform_1(%arg0: i32) -> (i32, i32) {
    %c0_i32 = arith.constant 0 : i32
    %c0_i32_0 = arith.constant 0 : i32
    %c0_i32_1 = arith.constant 0 : i32
    return %c0_i32, %c0_i32_0 : i32, i32
  }
  func.func @transform_2(%arg0: i32) -> (i32, i32) {
    %c0_i32 = arith.constant 0 : i32
    %c0_i32_0 = arith.constant 0 : i32
    %c0_i32_1 = arith.constant 0 : i32
    return %c0_i32, %c0_i32_0 : i32, i32
  }
  func.func @transform_3(%arg0: i32) -> (i32, i32) {
    %c0_i32 = arith.constant 0 : i32
    %c0_i32_0 = arith.constant 0 : i32
    %c0_i32_1 = arith.constant 0 : i32
    return %c0_i32, %c0_i32_0 : i32, i32
  }
  func.func @transform_4(%arg0: i32) -> (i32, i32) {
    %c0_i32 = arith.constant 0 : i32
    %c0_i32_0 = arith.constant 0 : i32
    %c0_i32_1 = arith.constant 0 : i32
    return %c0_i32, %c0_i32_0 : i32, i32
  }
  func.func @transform_5(%arg0: i32) -> (i32, i32) {
    %c0_i32 = arith.constant 0 : i32
    %c0_i32_0 = arith.constant 0 : i32
    %c0_i32_1 = arith.constant 0 : i32
    return %c0_i32, %c0_i32_0 : i32, i32
  }
  func.func @transform_6(%arg0: i32) -> (i32, i32) {
    %c0_i32 = arith.constant 0 : i32
    %c0_i32_0 = arith.constant 0 : i32
    %c0_i32_1 = arith.constant 0 : i32
    return %c0_i32, %c0_i32_0 : i32, i32
  }
  func.func @transform_7(%arg0: i32) -> (i32, i32) {
    %c0_i32 = arith.constant 0 : i32
    %c0_i32_0 = arith.constant 0 : i32
    %c0_i32_1 = arith.constant 0 : i32
    return %c0_i32, %c0_i32_0 : i32, i32
  }
  func.func @transform_8(%arg0: i32) -> (i32, i32) {
    %c0_i32 = arith.constant 0 : i32
    %c0_i32_0 = arith.constant 0 : i32
    %c0_i32_1 = arith.constant 0 : i32
    return %c0_i32, %c0_i32_0 : i32, i32
  }
  func.func @transform_9(%arg0: i32) -> (i32, i32) {
    %c0_i32 = arith.constant 0 : i32
    %c0_i32_0 = arith.constant 0 : i32
    %c0_i32_1 = arith.constant 0 : i32
    return %c0_i32, %c0_i32_0 : i32, i32
  }
  func.func @transform_10(%arg0: i32) -> (i32, i32) {
    %c0_i32 = arith.constant 0 : i32
    %c0_i32_0 = arith.constant 0 : i32
    %c0_i32_1 = arith.constant 0 : i32
    return %c0_i32, %c0_i32_0 : i32, i32
  }
  func.func @transform_11(%arg0: i32) -> (i32, i32) {
    %c0_i32 = arith.constant 0 : i32
    %c0_i32_0 = arith.constant 0 : i32
    return %c0_i32, %arg0 : i32, i32
  }
}

</mosaic_0001>

<bundles_post_ra>
// kernel: fat_forward.1
= control target key start
LH: loop header
LB: loop body
LE: loop exit
PB: predicated region body
PF: predicated region fallthrough
CT: control target
= control target key end

     0   :  { %vm57_vm0 = vcmask 64512   ;;  %v1057_v5 = vmov 0.0   ;;  %s1240_s0 = inlined_call_operand.vmem [shape: f32[8,512], index: 0, kind: input, shape index: {}]   ;;  %s1241_s1 = inlined_call_operand.vmem [shape: f32[16,8], index: 1, kind: input, shape index: {}]   ;;  %s1242_s2 = inlined_call_operand.vmem [shape: f32[16,1], index: 2, kind: input, shape index: {}]   ;;  %s1243_s3 = inlined_call_operand.vmem [shape: f32[32,16], index: 3, kind: input, shape index: {}]   ;;  %s1244_s4 = inlined_call_operand.vmem [shape: f32[32,1], index: 4, kind: input, shape index: {}]   ;;  %s1245_s5 = inlined_call_operand.vmem [shape: f32[16,32], index: 5, kind: input, shape index: {}]   ;;  %s1246_s6 = inlined_call_operand.vmem [shape: f32[16,1], index: 6, kind: input, shape index: {}]   ;;  %s1247_s7 = inlined_call_operand.vmem [shape: f32[8,16], index: 7, kind: input, shape index: {}]   ;;  %s1248_s8 = inlined_call_operand.vmem [shape: f32[8,1], index: 8, kind: input, shape index: {}]   ;;  %s1249_s9 = inlined_call_operand.vmem [shape: f32[3,8], index: 9, kind: input, shape index: {}]   ;;  %s1250_s10 = inlined_call_operand.vmem [shape: f32[3,1], index: 10, kind: input, shape index: {}]   ;;  %s1251_s11 = inlined_call_operand.hbm [shape: f32[3,512], index: 11, kind: output, shape index: {}]  }
   0x1   :  { %v40_v0 = vld [vmem:[%s1240_s0 + $0x8] sm:$0xff]  ;;  %v42_v1 = vld [vmem:[%s1240_s0 + $0x18] sm:$0xff]  ;;  %v39_v2 = vld [vmem:[%s1240_s0] sm:$0xff]  ;;  %128 = vmatprep.mubr.f32.mxu0 %v1057_v5  ;;  %205 = vmatprep.mubr.f32.mxu1 %v1057_v5 }
   0x2   :  { %64 = vmatprep.subr.mxu0 %v40_v0  ;;  %141 = vmatprep.subr.mxu1 %v42_v1  ;;  %v41_v3 = vld [vmem:[%s1240_s0 + $0x10] sm:$0xff]  ;;  %v43_v4 = vld [vmem:[%s1241_s1] sm:$0xff] }
   0x3   :  { %65 = vmatpush1.msra.mxu0 %v39_v2  ;;  %142 = vmatpush1.msra.mxu1 %v41_v3 }
   0x4   :  { %16 = vsyncpa [#allocation3], 0  ;;  %976 = vmatmul.mubr.msk.f32.vlgmr.msra.gmra.mrb[0].mxu0 %vm57_vm0, %v43_v4  ;;  %978 = vmatmul.mubr.msk.f32.vlgmr.msra.gmra.mrb[0].mxu1 %vm57_vm0, %v43_v4  ;;  %v45_v6 = vld [vmem:[%s1242_s2] sm:$0xff]  ;;  %v44_v7 = vld [vmem:[%s1241_s1 + $0x8] sm:$0xff]  ;;  %v1058_v8 = vmov 0   ;;  %vm254_vm1 = vcmask 130048  }
   0x5   :  { %134 = vmatprep.mubr.f32.mxu0 %v1057_v5  ;;  %211 = vmatprep.mubr.f32.mxu1 %v1057_v5  ;;  %v46_v9 = vld [vmem:[%s1242_s2 + $0x8] sm:$0xff]  ;;  %v232_v10 = vld [vmem:[%s1244_s4 + $0x10] sm:$0xff]  ;;  %v463_v11 = vld [vmem:[%s1246_s6] sm:$0xff]  ;;  %vm475_vm2 = vcmask 261120   ;;  %s1059_s15 = smov [#allocation2]  }
   0x6   :  { %1031 = vset.pattern.permute.xlu0 %v1058_v8  ;;  %1032 = vset.pattern.permute.xlu1 %v1058_v8  ;;  %v645_v12 = vld [vmem:[%s1248_s8] sm:$0xff]  ;;  %v231_v14 = vld [vmem:[%s1244_s4 + $0x8] sm:$0xff]  ;;  %v233_v15 = vld [vmem:[%s1244_s4 + $0x18] sm:$0xff]  ;;  %s968_s16 = sshll.u32 %s1059_s15, 4  ;;  %s969_s16 = int_to_ptr.vmem [resolvable:$true] %s968_s16 }
   0x7   :  { %49 = vperm.xlu0 %1031, %v45_v6   ;;  %v230_v13 = vld [vmem:[%s1244_s4] sm:$0xff]  ;;  %v464_v16 = vld [vmem:[%s1246_s6 + $0x8] sm:$0xff]  ;;  %v228_v50 = vld [vmem:[%s1243_s3 + $0x10] sm:$0xff]  ;;  %p1038_p1 = scmp.lt.s32.totalorder %s969_s16, %s969_s16 }
   0x8   :  { %977 = vmatmul.mubr.msk.f32.gmra.mrb[2].mxu0 %vm57_vm0, %v44_v7  ;;  %979 = vmatmul.mubr.msk.f32.gmra.mrb[2].mxu1 %vm57_vm0, %v44_v7  ;;  %v801_v17 = vld [vmem:[%s1250_s10] sm:$0x7]  ;;  %v227_v49 = vld [vmem:[%s1243_s3 + $0x8] sm:$0xff]  ;;  %v229_v51 = vld [vmem:[%s1243_s3 + $0x18] sm:$0xff] }
   0x9   :  { %331 = vmatprep.mubr.f32.mxu0 %v1057_v5  ;;  %420 = vmatprep.mubr.f32.mxu1 %v1057_v5  ;;  %v226_v48 = vld [vmem:[%s1243_s3] sm:$0xff] }
   0xa   :  { %236 = vperm.xlu1 %1032, %v230_v13  }
   0xb   :  { %54 = vperm.xlu0 %1031, %v46_v9  }
   0xe   :  { %241 = vperm.xlu1 %1032, %v231_v14  }
   0xf   :  { %246 = vperm.xlu0 %1031, %v232_v10  }
  0x12   :  { %251 = vperm.xlu1 %1032, %v233_v15  }
  0x13   :  { %467 = vperm.xlu0 %1031, %v463_v11  }
  0x16   :  { %472 = vperm.xlu1 %1032, %v464_v16  }
  0x17   :  { %648 = vperm.xlu0 %1031, %v645_v12  }
  0x1a   :  { %804 = vperm.xlu1 %1032, %v801_v17  }
  0x86   :  { %v50_v18 = vpop.permute.xlu0 %49 }
  0x89   :  { %v237_v52 = vpop.permute.xlu1 %236 }
  0x8a   :  { %v55_v23 = vpop.permute.xlu0 %54 }
  0x8d   :  { %v242_v57 = vpop.permute.xlu1 %241 }
  0xd7   :  { %v130_v19 = vpop.f32.mrb[0].mxu0  ;;  %v207_v20 = vpop.f32.mrb[0].mxu1 }
  0xd8   :  { %v132_v21 = vpop.f32.mrb[1].mxu0  ;;  %v209_v22 = vpop.f32.mrb[1].mxu1  ;;  %v131_v24 = vadd.f32 %v130_v19, %v50_v18  ;;  %v208_v25 = vadd.f32 %v207_v20, %v50_v18 }
  0xd9   :  { %v133_v26 = vadd.f32 %v132_v21, %v50_v18  ;;  %v210_v27 = vadd.f32 %v209_v22, %v50_v18  ;;  %v247_v21 = vpop.permute.xlu0 %246 }
  0xda   :  { %v218_v36 = vmax.f32 %v131_v24, 0.0  ;;  %v220_v37 = vmax.f32 %v208_v25, 0.0  ;;  %v252_v24 = vpop.permute.xlu1 %251 }
  0xdb   :  { %v136_v28 = vpop.f32.mrb[2].mxu0  ;;  %v213_v29 = vpop.f32.mrb[2].mxu1  ;;  %v219_v40 = vmax.f32 %v133_v26, 0.0  ;;  %v221_v41 = vmax.f32 %v210_v27, 0.0 }
  0xdc   :  { %v137_v30 = vadd.f32 %v136_v28, %v55_v23  ;;  %v214_v31 = vadd.f32 %v213_v29, %v55_v23  ;;  %v138_v32 = vpop.f32.mrb[3].mxu0  ;;  %v215_v33 = vpop.f32.mrb[3].mxu1 }
  0xdd   :  { %v139_v34 = vadd.f32 %v138_v32, %v55_v23  ;;  %v216_v35 = vadd.f32 %v215_v33, %v55_v23 }
  0xde   :  { %v222_v38 = vmax.f32 %v137_v30, 0.0  ;;  %v224_v39 = vmax.f32 %v214_v31, 0.0 }
  0xdf   :  { %v223_v42 = vmax.f32 %v139_v34, 0.0  ;;  %v225_v43 = vmax.f32 %v216_v35, 0.0 }
  0xe0   :  { %v998_v44 = vpack.c.bf16 %v222_v38, %v218_v36  ;;  %v1002_v45 = vpack.c.bf16 %v224_v39, %v220_v37 }
  0xe1   :  { %v996_v46 = vpack.c.bf16 %v223_v42, %v219_v40  ;;  %v1000_v47 = vpack.c.bf16 %v225_v43, %v221_v41 }
  0xe3   :  { %997 = vmatprep.subr.bf16.mxu0 %v996_v46  ;;  %1001 = vmatprep.subr.bf16.mxu1 %v1000_v47 }
  0xe4   :  { %999 = vmatpush1.bf16.msra.mxu0 %v998_v44  ;;  %1003 = vmatpush1.bf16.msra.mxu1 %v1002_v45 }
  0xe7   :  { %980 = vmatmul.mubr.msk.f32.vlgmr.msra.gmra.mrb[4].mxu0 %vm254_vm1, %v226_v48  ;;  %984 = vmatmul.mubr.msk.f32.vlgmr.msra.gmra.mrb[4].mxu1 %vm254_vm1, %v226_v48 }
  0xe8   :  { %337 = vmatprep.mubr.f32.mxu0 %v1057_v5  ;;  %426 = vmatprep.mubr.f32.mxu1 %v1057_v5 }
  0xeb   :  { %981 = vmatmul.mubr.msk.f32.gmra.mrb[6].mxu0 %vm254_vm1, %v227_v49  ;;  %985 = vmatmul.mubr.msk.f32.gmra.mrb[6].mxu1 %vm254_vm1, %v227_v49  ;;  %v461_v49 = vld [vmem:[%s1245_s5] sm:$0xff] }
  0xec   :  { %343 = vmatprep.mubr.f32.mxu0 %v1057_v5  ;;  %432 = vmatprep.mubr.f32.mxu1 %v1057_v5 }
  0xef   :  { %982 = vmatmul.mubr.msk.f32.gmra.mrb[8].mxu0 %vm254_vm1, %v228_v50  ;;  %986 = vmatmul.mubr.msk.f32.gmra.mrb[8].mxu1 %vm254_vm1, %v228_v50  ;;  %v462_v50 = vld [vmem:[%s1245_s5 + $0x8] sm:$0xff] }
  0xf0   :  { %349 = vmatprep.mubr.f32.mxu0 %v1057_v5  ;;  %438 = vmatprep.mubr.f32.mxu1 %v1057_v5 }
  0xf3   :  { %983 = vmatmul.mubr.msk.f32.gmra.mrb[10].mxu0 %vm254_vm1, %v229_v51  ;;  %987 = vmatmul.mubr.msk.f32.gmra.mrb[10].mxu1 %vm254_vm1, %v229_v51 }
  0xf4   :  { %546 = vmatprep.mubr.f32.mxu0 %v1057_v5  ;;  %623 = vmatprep.mubr.f32.mxu1 %v1057_v5 }
 0x1ba   :  { %v333_v53 = vpop.f32.mrb[4].mxu0  ;;  %v422_v54 = vpop.f32.mrb[4].mxu1 }
 0x1bb   :  { %v335_v55 = vpop.f32.mrb[5].mxu0  ;;  %v424_v56 = vpop.f32.mrb[5].mxu1  ;;  %v334_v58 = vadd.f32 %v333_v53, %v237_v52  ;;  %v423_v59 = vadd.f32 %v422_v54, %v237_v52 }
 0x1bc   :  { %v336_v60 = vadd.f32 %v335_v55, %v237_v52  ;;  %v425_v61 = vadd.f32 %v424_v56, %v237_v52  ;;  %v468_v55 = vpop.permute.xlu0 %467  ;;  %v473_v56 = vpop.permute.xlu1 %472 }
 0x1bd   :  { %v445_v7 = vmax.f32 %v334_v58, 0.0  ;;  %v447_v8 = vmax.f32 %v423_v59, 0.0 }
 0x1be   :  { %v339_v62 = vpop.f32.mrb[6].mxu0  ;;  %v428_v63 = vpop.f32.mrb[6].mxu1  ;;  %v446_v11 = vmax.f32 %v336_v60, 0.0  ;;  %v448_v12 = vmax.f32 %v425_v61, 0.0 }
 0x1bf   :  { %v340_v0 = vadd.f32 %v339_v62, %v242_v57  ;;  %v429_v1 = vadd.f32 %v428_v63, %v242_v57  ;;  %v341_v2 = vpop.f32.mrb[7].mxu0  ;;  %v430_v3 = vpop.f32.mrb[7].mxu1 }
 0x1c0   :  { %v342_v4 = vadd.f32 %v341_v2, %v242_v57  ;;  %v431_v6 = vadd.f32 %v430_v3, %v242_v57 }
 0x1c1   :  { %v449_v9 = vmax.f32 %v340_v0, 0.0  ;;  %v451_v10 = vmax.f32 %v429_v1, 0.0 }
 0x1c2   :  { %v450_v13 = vmax.f32 %v342_v4, 0.0  ;;  %v452_v14 = vmax.f32 %v431_v6, 0.0  ;;  %v345_v15 = vpop.f32.mrb[8].mxu0  ;;  %v434_v16 = vpop.f32.mrb[8].mxu1 }
 0x1c3   :  { %v1006_v17 = vpack.c.bf16 %v449_v9, %v445_v7  ;;  %v1014_v18 = vpack.c.bf16 %v451_v10, %v447_v8  ;;  %v347_v19 = vpop.f32.mrb[9].mxu0  ;;  %v436_v20 = vpop.f32.mrb[9].mxu1  ;;  %v346_v25 = vadd.f32 %v345_v15, %v247_v21  ;;  %v435_v26 = vadd.f32 %v434_v16, %v247_v21 }
 0x1c4   :  { %v1004_v22 = vpack.c.bf16 %v450_v13, %v446_v11  ;;  %v1012_v23 = vpack.c.bf16 %v452_v14, %v448_v12  ;;  %v348_v27 = vadd.f32 %v347_v19, %v247_v21  ;;  %v437_v28 = vadd.f32 %v436_v20, %v247_v21  ;;  %v649_v19 = vpop.permute.xlu0 %648 }
 0x1c5   :  { %v453_v37 = vmax.f32 %v346_v25, 0.0  ;;  %v455_v38 = vmax.f32 %v435_v26, 0.0 }
 0x1c6   :  { %v351_v29 = vpop.f32.mrb[10].mxu0  ;;  %v440_v30 = vpop.f32.mrb[10].mxu1  ;;  %1005 = vmatprep.subr.bf16.mxu0 %v1004_v22  ;;  %1013 = vmatprep.subr.bf16.mxu1 %v1012_v23  ;;  %v454_v41 = vmax.f32 %v348_v27, 0.0  ;;  %v456_v42 = vmax.f32 %v437_v28, 0.0 }
 0x1c7   :  { %v352_v31 = vadd.f32 %v351_v29, %v252_v24  ;;  %v441_v32 = vadd.f32 %v440_v30, %v252_v24  ;;  %v353_v33 = vpop.f32.mrb[11].mxu0  ;;  %v442_v34 = vpop.f32.mrb[11].mxu1  ;;  %1007 = vmatpush1.bf16.msra.mxu0 %v1006_v17  ;;  %1015 = vmatpush1.bf16.msra.mxu1 %v1014_v18  ;;  %v644_v18 = vld [vmem:[%s1247_s7] sm:$0xff] }
 0x1c8   :  { %v354_v35 = vadd.f32 %v353_v33, %v252_v24  ;;  %v443_v36 = vadd.f32 %v442_v34, %v252_v24 }
 0x1c9   :  { %v457_v39 = vmax.f32 %v352_v31, 0.0  ;;  %v459_v40 = vmax.f32 %v441_v32, 0.0  ;;  %v800_v32 = vld [vmem:[%s1249_s9] sm:$0x7]  ;;  %s1033_s9 = scalar_lea.vmem %s969_s16, 256 }
 0x1ca   :  { %v458_v43 = vmax.f32 %v354_v35, 0.0  ;;  %v460_v44 = vmax.f32 %v443_v36, 0.0  ;;  %p1034_p0 = scmp.ne.s32.totalorder %s969_s16, %s1033_s9  ;;  %p1039_p2 = scmp.lt.s32.totalorder %s1033_s9, %s1033_s9 }
 0x1cb   :  { %v1010_v45 = vpack.c.bf16 %v457_v39, %v453_v37  ;;  %v1018_v46 = vpack.c.bf16 %v459_v40, %v455_v38 }
 0x1cc   :  { %v1008_v47 = vpack.c.bf16 %v458_v43, %v454_v41  ;;  %v1016_v48 = vpack.c.bf16 %v460_v44, %v456_v42  ;;  %p1040_p3 = por %p1039_p2, %p1038_p1 }
 0x1ce   :  { %1009 = vmatprep.subr.bf16.mxu0 %v1008_v47  ;;  %1017 = vmatprep.subr.bf16.mxu1 %v1016_v48  ;;  %p1041_p4 = pnand %p1040_p3, %p1034_p0 }
 0x1cf   :  { %1011 = vmatpush1.bf16.msra.mxu0 %v1010_v45  ;;  %1019 = vmatpush1.bf16.msra.mxu1 %v1018_v46 }
 0x1d2   :  { %988 = vmatmul.mubr.msk.f32.vlgmr.msra.gmra.mrb[12].mxu0 %vm475_vm2, %v461_v49  ;;  %990 = vmatmul.mubr.msk.f32.vlgmr.msra.gmra.mrb[12].mxu1 %vm475_vm2, %v461_v49 }
 0x1d3   :  { %552 = vmatprep.mubr.f32.mxu0 %v1057_v5  ;;  %629 = vmatprep.mubr.f32.mxu1 %v1057_v5 }
 0x1d6   :  { %989 = vmatmul.mubr.msk.f32.gmra.mrb[14].mxu0 %vm475_vm2, %v462_v50  ;;  %991 = vmatmul.mubr.msk.f32.gmra.mrb[14].mxu1 %vm475_vm2, %v462_v50 }
 0x1d7   :  { %718 = vmatprep.mubr.f32.mxu0 %v1057_v5  ;;  %789 = vmatprep.mubr.f32.mxu1 %v1057_v5 }
 0x2a5   :  { %v548_v51 = vpop.f32.mrb[12].mxu0  ;;  %v625_v52 = vpop.f32.mrb[12].mxu1 }
 0x2a6   :  { %v550_v53 = vpop.f32.mrb[13].mxu0  ;;  %v627_v54 = vpop.f32.mrb[13].mxu1  ;;  %v549_v57 = vadd.f32 %v548_v51, %v468_v55  ;;  %v626_v58 = vadd.f32 %v625_v52, %v468_v55 }
 0x2a7   :  { %v551_v59 = vadd.f32 %v550_v53, %v468_v55  ;;  %v628_v60 = vadd.f32 %v627_v54, %v468_v55 }
 0x2a8   :  { %v636_v6 = vmax.f32 %v549_v57, 0.0  ;;  %v638_v7 = vmax.f32 %v626_v58, 0.0 }
 0x2a9   :  { %v554_v61 = vpop.f32.mrb[14].mxu0  ;;  %v631_v62 = vpop.f32.mrb[14].mxu1  ;;  %v637_v10 = vmax.f32 %v551_v59, 0.0  ;;  %v639_v11 = vmax.f32 %v628_v60, 0.0 }
 0x2aa   :  { %v555_v63 = vadd.f32 %v554_v61, %v473_v56  ;;  %v632_v0 = vadd.f32 %v631_v62, %v473_v56  ;;  %v556_v1 = vpop.f32.mrb[15].mxu0  ;;  %v633_v2 = vpop.f32.mrb[15].mxu1 }
 0x2ab   :  { %v557_v3 = vadd.f32 %v556_v1, %v473_v56  ;;  %v634_v4 = vadd.f32 %v633_v2, %v473_v56 }
 0x2ac   :  { %v640_v8 = vmax.f32 %v555_v63, 0.0  ;;  %v642_v9 = vmax.f32 %v632_v0, 0.0 }
 0x2ad   :  { %v641_v12 = vmax.f32 %v557_v3, 0.0  ;;  %v643_v13 = vmax.f32 %v634_v4, 0.0 }
 0x2ae   :  { %v1022_v14 = vpack.c.bf16 %v640_v8, %v636_v6  ;;  %v1026_v15 = vpack.c.bf16 %v642_v9, %v638_v7 }
 0x2af   :  { %v1020_v16 = vpack.c.bf16 %v641_v12, %v637_v10  ;;  %v1024_v17 = vpack.c.bf16 %v643_v13, %v639_v11 }
 0x2b1   :  { %1021 = vmatprep.subr.bf16.mxu0 %v1020_v16  ;;  %1025 = vmatprep.subr.bf16.mxu1 %v1024_v17 }
 0x2b2   :  { %1023 = vmatpush1.bf16.msra.mxu0 %v1022_v14  ;;  %1027 = vmatpush1.bf16.msra.mxu1 %v1026_v15 }
 0x2b5   :  { %992 = vmatmul.mubr.msk.f32.vlgmr.msra.gmra.mrb[16].mxu0 %vm254_vm1, %v644_v18  ;;  %993 = vmatmul.mubr.msk.f32.vlgmr.msra.gmra.mrb[16].mxu1 %vm254_vm1, %v644_v18 }
 0x2b6   :  { %874 = vmatprep.mubr.f32.mxu0 %v1057_v5  ;;  %945 = vmatprep.mubr.f32.mxu1 %v1057_v5  ;;  %v805_v5 = vpop.permute.xlu1 %804 }
 0x388   :  { %v720_v20 = vpop.f32.mrb[16].mxu0  ;;  %v791_v21 = vpop.f32.mrb[16].mxu1 }
 0x389   :  { %v721_v22 = vadd.f32 %v720_v20, %v649_v19  ;;  %v792_v23 = vadd.f32 %v791_v21, %v649_v19  ;;  %v722_v24 = vpop.f32.mrb[17].mxu0  ;;  %v793_v25 = vpop.f32.mrb[17].mxu1 }
 0x38a   :  { %v723_v26 = vadd.f32 %v722_v24, %v649_v19  ;;  %v794_v27 = vadd.f32 %v793_v25, %v649_v19 }
 0x38b   :  { %v796_v30 = vmax.f32 %v721_v22, 0.0  ;;  %v798_v31 = vmax.f32 %v792_v23, 0.0 }
 0x38c   :  { %v797_v28 = vmax.f32 %v723_v26, 0.0  ;;  %v799_v29 = vmax.f32 %v794_v27, 0.0 }
 0x38e   :  { %810 = vmatprep.subr.mxu0 %v797_v28  ;;  %881 = vmatprep.subr.mxu1 %v799_v29 }
 0x38f   :  { %811 = vmatpush1.msra.mxu0 %v796_v30  ;;  %882 = vmatpush1.msra.mxu1 %v798_v31 }
 0x390   :  { %994 = vmatmul.mubr.msk.f32.vlgmr.msra.gmra.mrb[18].mxu0 %vm57_vm0, %v800_v32  ;;  %995 = vmatmul.mubr.msk.f32.vlgmr.msra.gmra.mrb[18].mxu1 %vm57_vm0, %v800_v32 }
 0x463   :  { %v876_v33 = vpop.f32.mrb[18].mxu0  ;;  %v947_v34 = vpop.f32.mrb[18].mxu1 }
 0x464   :  { %v877_v35 = vadd.f32 %v876_v33, %v805_v5  ;;  %v948_v36 = vadd.f32 %v947_v34, %v805_v5  ;;  %v878_v37 = vpop.f32.mrb[19].mxu0  ;;  %v949_v38 = vpop.f32.mrb[19].mxu1 }
 0x465   :  { %v879_v39 = vadd.f32 %v878_v37, %v805_v5  ;;  %v950_v40 = vadd.f32 %v949_v38, %v805_v5 }
 0x467   :  { %v956_v41 = vcombine.low %v877_v35, %v879_v39  ;;  %v957_v42 = vcombine.low %v948_v36, %v950_v40 }
 0x469   :  { %960 = vst [vmem:[#allocation2] sm:$0x77] %v956_v41  ;;  %961 = vst [vmem:[#allocation2 + $0x8] sm:$0x77] %v957_v42 }
 0x46a   :  { %1044 = shalt.err (!%p1041_p4)
}
 0x46b   :  { %s1045_s18 = scalar_lea.hbm %s1251_s11, 256 }
 0x46c   :  { %p1046_p5 = scmp.ne.s32.totalorder %s1251_s11, %s1045_s18  ;;  %p1049_p6 = scmp.lt.u32.totalorder %s1045_s18, %s1251_s11 }
 0x46e   :  { %p1051_p7 = pnand %p1049_p6, %p1046_p5 }
 0x470   :  { %1054 = shalt.err (!%p1051_p7)
}
 0x471   :  { %971 = dma.vmem_to_hbm [thread:$0]  %s969_s16, 256, %s1251_s11, [#allocation3]  }
 0x472   :  { %1055 = dma.done.wait [#allocation3], 256  }
 0x473   :  { %1056 = vsyncadd [#allocation3], 4294967040 }
 0x474   :  { %975 = vsyncpa [#allocation3], 1 }

</bundles_post_ra>
